<compile_context>
chip_gen: v7x
topology: tpu7x:2x2x1
jax: 0.10.0
libtpu: 0.0.40
codegen_flags: <defaults>
</compile_context>

<pallas_src>
import jax
import jax.numpy as jnp
from jax.experimental import pallas as pl
from jax.experimental.pallas import tpu as pltpu


def _round_down(x, m):
    return (x // m) * m


def _round_up(x, m):
    return ((x + m - 1) // m) * m


def _vmem_capacity_bytes():
    """Physical per-core VMEM; conservative fallback (v7x has 64 MiB / TC)."""
    try:
        info = pltpu.get_tpu_info()
        cap = int(getattr(info, "vmem_capacity_bytes", 0) or 0)
        if cap > 0:
            return cap
    except Exception:
        pass
    return 64 << 20


def _make_kernel(D, add_bias, fuse_bias_store):
    if not add_bias:
        def kernel(x_ref, o_ref):
            o_ref[...] = x_ref[...]
    elif fuse_bias_store:
        # D is not lane-aligned: one fused store of the whole tile avoids a
        # second masked vst on the boundary vreg column.
        def kernel(x_ref, o_ref):
            ones = jnp.ones((x_ref.shape[0], 1), dtype=o_ref.dtype)
            o_ref[...] = jnp.concatenate([x_ref[...], ones], axis=-1)
    else:
        # D is a multiple of 128: the copy is fully unmasked; the bias column
        # is the single inherent 1-lane store.
        def kernel(x_ref, o_ref):
            o_ref[:, :D] = x_ref[...]
            o_ref[:, D:] = jnp.ones((x_ref.shape[0], 1), dtype=o_ref.dtype)
    return kernel


def _pick_block_rows(B, D, out_D, itemsize, budget_bytes, sublane_rows):
    """Largest sublane-aligned batch-row block that (a) keeps the live
    double-buffered in+out blocks within the budget and (b) leaves >= 2 grid
    steps when the batch is big enough (lets 'parallel' shard across v7x's
    two TensorCores; one extra ~0.35us step is noise on v5e/v6e)."""
    per_row = 2 * (D + out_D) * itemsize                 # in + out, double-buffered
    rows_fit = max(sublane_rows, _round_down(budget_bytes // per_row, sublane_rows))
    if B < 2 * sublane_rows:
        return B                                         # whole (small) batch, one step
    half = _round_up(pl.cdiv(B, 2), sublane_rows)        # >= 2 steps when possible
    nb = min(rows_fit, half)
    return max(sublane_rows, _round_down(nb, sublane_rows))


def input_conceptizer_forward(x, add_bias=True, *, min_pallas_bytes=128 << 10):
    """H(x): (b, c, d, d) -> (b, d*d [+1], 1)  or  (b, dim) -> (b, dim [+1], 1)."""
    if x.ndim == 4:
        b, d = x.shape[0], x.shape[-1]
        dim = d * d
        if x.size != b * dim:
            # PyTorch's x.view(b, d*d, 1) only succeeds when c == 1.
            raise ValueError(
                "input_conceptizer 4D path requires c == 1 "
                f"(view(b, d*d, 1) needs b*c*d*d == b*d*d); got shape {x.shape}")
        x2 = x.reshape(b, dim)                           # metadata-only, outside the kernel
    elif x.ndim == 2:
        b, dim = x.shape
        x2 = x
    else:
        raise ValueError(f"expected 2D or 4D input, got shape {x.shape}")

    out_dim = dim + (1 if add_bias else 0)
    itemsize = jnp.dtype(x2.dtype).itemsize

    # Tiny problems: launch/DMA-setup overhead of a custom call dominates a
    # pure copy; let XLA's pad/reshape fuse into the surrounding graph.
    if b * dim * itemsize < min_pallas_bytes:
        out2d = jnp.pad(x2, ((0, 0), (0, 1)), constant_values=1) if add_bias else x2
        return out2d.reshape(b, out_dim, 1)

    vmem_cap = _vmem_capacity_bytes()
    budget = min(32 << 20, vmem_cap // 2)                # live double-buffered blocks
    sublane_rows = max(8, 32 // itemsize)                # f32: 8, bf16: 16, int8/fp8: 32
    nb = _pick_block_rows(b, dim, out_dim, itemsize, budget, sublane_rows)
    grid = (pl.cdiv(b, nb),)                             # ragged last block handled by Pallas

    live_bytes = 2 * nb * (dim + out_dim) * itemsize
    vmem_limit = int(min(vmem_cap, max(live_bytes + (2 << 20), 16 << 20)))

    fuse_bias_store = add_bias and (dim % 128 != 0)

    out2d = pl.pallas_call(
        _make_kernel(dim, add_bias, fuse_bias_store),
        out_shape=jax.ShapeDtypeStruct((b, out_dim), x2.dtype),
        grid=grid,
        in_specs=[pl.BlockSpec((nb, dim), lambda i: (i, 0))],
        out_specs=pl.BlockSpec((nb, out_dim), lambda i: (i, 0)),
        compiler_params=pltpu.CompilerParams(
            dimension_semantics=("parallel",),
            vmem_limit_bytes=vmem_limit),
    )(x2)

    # Trailing size-1 concept axis is pure metadata: add it outside the kernel.
    return out2d.reshape(b, out_dim, 1)


def _ref_forward(x, add_bias=True):
    """Pure-JAX reference with identical math."""
    if x.ndim == 4:
        b, d = x.shape[0], x.shape[-1]
        out = x.reshape(b, d * d, 1)
    else:
        out = x.reshape(x.shape[0], x.shape[1], 1)
    if add_bias:
        out = jnp.pad(out, ((0, 0), (0, 1), (0, 0)), constant_values=1)
    return out


if __name__ == "__main__":
    key = jax.random.PRNGKey(0)
    k1, k2, k3 = jax.random.split(key, 3)

    # 1) Image input (b, c=1, d, d): dim = 256 (lane-aligned) -> two-store kernel.
    x_img = jax.random.normal(k1, (2, 1, 16, 16), jnp.float32)
    out_img = jax.block_until_ready(
        input_conceptizer_forward(x_img, add_bias=True, min_pallas_bytes=0))
    ref_img = _ref_forward(x_img, add_bias=True)
    assert out_img.shape == (2, 16 * 16 + 1, 1), out_img.shape
    assert bool(jnp.array_equal(out_img, ref_img)), \
        f"max abs err = {jnp.max(jnp.abs(out_img - ref_img))}"

    # 2) Generic 2D input (b, 32): dim not lane-aligned -> fused single-store kernel.
    x_vec = jax.random.normal(k2, (2, 32), jnp.float32)
    out_vec = jax.block_until_ready(
        input_conceptizer_forward(x_vec, add_bias=True, min_pallas_bytes=0))
    ref_vec = _ref_forward(x_vec, add_bias=True)
    assert out_vec.shape == (2, 33, 1), out_vec.shape
    assert bool(jnp.array_equal(out_vec, ref_vec)), \
        f"max abs err = {jnp.max(jnp.abs(out_vec - ref_vec))}"

    # 3) Larger batch: >= 2 grid steps with a ragged (cdiv) last block.
    x_big = jax.random.normal(k3, (20, 1, 16, 16), jnp.float32)
    out_big = jax.block_until_ready(
        input_conceptizer_forward(x_big, add_bias=True, min_pallas_bytes=0))
    ref_big = _ref_forward(x_big, add_bias=True)
    assert out_big.shape == (20, 257, 1), out_big.shape
    assert bool(jnp.array_equal(out_big, ref_big)), \
        f"max abs err = {jnp.max(jnp.abs(out_big - ref_big))}"

    # 4) Default routing for tiny inputs (pure-XLA pad path) matches as well.
    out_def = jax.block_until_ready(input_conceptizer_forward(x_vec, add_bias=True))
    assert bool(jnp.array_equal(out_def, ref_vec))

    print("KERNEL_OK")
</pallas_src>

<mosaic_0001>
module attributes {stable_mosaic.version = 11 : i64} {
  func.func @kernel(%arg0: i32, %arg1: memref<2x256xf32, #tpu.memory_space<vmem>>, %arg2: memref<2x257xf32, #tpu.memory_space<vmem>>) attributes {dimension_semantics = [#tpu.dimension_semantics<parallel>], iteration_bounds = array<i64: 1>, scalar_prefetch = 0 : i64, scratch_operands = 0 : i64, tpu.core_type = #tpu.core_type<tc>, window_params = [{transform_indices = @transform_0, window_bounds = array<i64: 2, 256>}, {transform_indices = @transform_1, window_bounds = array<i64: 2, 257>}]} {
    %c0 = arith.constant 0 : index
    %c0_0 = arith.constant 0 : index
    %0 = vector.load %arg1[%c0, %c0_0] : memref<2x256xf32, #tpu.memory_space<vmem>>, vector<2x256xf32>
    %c0_1 = arith.constant 0 : index
    %c0_2 = arith.constant 0 : index
    %1 = vector.load %arg2[%c0_1, %c0_2] : memref<2x257xf32, #tpu.memory_space<vmem>>, vector<2x256xf32>
    tpu.vector_store %arg2[%c0_1, %c0_2], %0 {strides = array<i32>} : memref<2x257xf32, #tpu.memory_space<vmem>>, vector<2x256xf32>,
    %cst = arith.constant 1.000000e+00 : f32
    %2 = vector.broadcast %cst : f32 to vector<2x1xf32>
    %c0_3 = arith.constant 0 : index
    %c256 = arith.constant 256 : index
    %3 = vector.load %arg2[%c0_3, %c256] : memref<2x257xf32, #tpu.memory_space<vmem>>, vector<2x1xf32>
    tpu.vector_store %arg2[%c0_3, %c256], %2 {strides = array<i32>} : memref<2x257xf32, #tpu.memory_space<vmem>>, vector<2x1xf32>,
    return
  }
  func.func @transform_0(%arg0: i32) -> (i32, i32) {
    %c0_i32 = arith.constant 0 : i32
    %c0_i32_0 = arith.constant 0 : i32
    return %arg0, %c0_i32 : i32, i32
  }
  func.func @transform_1(%arg0: i32) -> (i32, i32) {
    %c0_i32 = arith.constant 0 : i32
    %c0_i32_0 = arith.constant 0 : i32
    return %arg0, %c0_i32 : i32, i32
  }
}

</mosaic_0001>

<bundles_post_ra>
// kernel: tpu_custom_call.1
= control target key start
LH: loop header
LB: loop body
LE: loop exit
PB: predicated region body
PF: predicated region fallthrough
CT: control target
= control target key end

     0   :  { %6 = vsyncpa [#allocation3], 0  ;;  %s128_s0 = inlined_call_operand.hbm [shape: f32[2,256], index: 0, kind: input, shape index: {}]   ;;  %s129_s1 = inlined_call_operand.hbm [shape: f32[2,257], index: 1, kind: output, shape index: {}]  }
   0x1   :  { %7 = vsyncpa [#allocation4], 0  ;;  %s91_s6 = smov [#allocation2]   ;;  %s43_s10 = scalar_lea.hbm %s128_s0, 64 }
   0x2   :  { %s14_s7 = sshll.u32 %s91_s6, 4  ;;  %p44_p0 = scmp.ne.s32.totalorder %s128_s0, %s43_s10  ;;  %s15_s7 = int_to_ptr.vmem [resolvable:$true] %s14_s7 }
   0x3   :  { %p47_p1 = scmp.lt.u32.totalorder %s43_s10, %s128_s0 }
   0x5   :  { %p49_p2 = pnand %p47_p1, %p44_p0 }
   0x7   :  { %52 = shalt.err (!%p49_p2)
}
   0x8   :  { %s53_s15 = scalar_lea.vmem %s15_s7, 64  ;;  %p58_p4 = scmp.lt.s32.totalorder %s15_s7, %s15_s7 }
   0x9   :  { %p54_p3 = scmp.ne.s32.totalorder %s15_s7, %s53_s15  ;;  %p59_p5 = scmp.lt.s32.totalorder %s53_s15, %s53_s15 }
   0xb   :  { %p60_p6 = por %p59_p5, %p58_p4 }
   0xd   :  { %p61_p7 = pnand %p60_p6, %p54_p3 }
   0xf   :  { %64 = shalt.err (!%p61_p7)
}
  0x10   :  { %17 = dma.hbm_to_vmem [thread:$0]  %s128_s0, 64, %s15_s7, [#allocation3]  }
  0x11   :  { %87 = dma.done.wait [#allocation3], 64  }
  0x12   :  { %88 = vsyncadd [#allocation3], 4294967232  ;;  %vm23_vm0 = vcmask 1024   ;;  %v92_v0 = vmov 1.0   ;;  %s93_s18 = smov [#allocation5]  }
  0x13   :  { %24 = vst.msk [vmem:[#allocation5 + $0x4] sm:$0x3] %vm23_vm0, %v92_v0  ;;  %s31_s19 = sshll.u32 %s93_s18, 4  ;;  %v21_v1 = vld [vmem:[#allocation2] sm:$0xf]  ;;  %s32_s19 = int_to_ptr.vmem [resolvable:$true] %s31_s19 }
  0x14   :  { %22 = vst [vmem:[#allocation5] sm:$0xf] %v21_v1  ;;  %s65_s20 = scalar_lea.vmem %s32_s19, 96  ;;  %p70_p9 = scmp.lt.s32.totalorder %s32_s19, %s32_s19 }
  0x15   :  { %p66_p8 = scmp.ne.s32.totalorder %s32_s19, %s65_s20  ;;  %p71_p10 = scmp.lt.s32.totalorder %s65_s20, %s65_s20 }
  0x17   :  { %p72_p11 = por %p71_p10, %p70_p9 }
  0x19   :  { %p73_p12 = pnand %p72_p11, %p66_p8 }
  0x1b   :  { %76 = shalt.err (!%p73_p12)
}
  0x1c   :  { %s77_s0 = scalar_lea.hbm %s129_s1, 96 }
  0x1d   :  { %p78_p13 = scmp.ne.s32.totalorder %s129_s1, %s77_s0  ;;  %p81_p0 = scmp.lt.u32.totalorder %s77_s0, %s129_s1 }
  0x1f   :  { %p83_p1 = pnand %p81_p0, %p78_p13 }
  0x21   :  { %86 = shalt.err (!%p83_p1)
}
  0x22   :  { %34 = dma.vmem_to_hbm [thread:$0]  %s32_s19, 96, %s129_s1, [#allocation4]  }
  0x23   :  { %89 = dma.done.wait [#allocation4], 96  }
  0x24   :  { %90 = vsyncadd [#allocation4], 4294967200 }
  0x25   :  { %38 = vsyncpa [#allocation3], 1 }
  0x26   :  { %39 = vsyncpa [#allocation4], 1 }

</bundles_post_ra>
